<compile_context>
chip_gen: v6e
topology: v6e:2x2x1
jax: 0.10.0
libtpu: 0.0.40
codegen_flags: <defaults>
</compile_context>

<pallas_src>
import functools

import jax
import jax.numpy as jnp
from jax.experimental import pallas as pl
from jax.experimental.pallas import tpu as pltpu


def _round_up(x, m):
    return ((x + m - 1) // m) * m


# --------------------------------------------------------------------------
# Small dense projection  X @ W  (hoisted out of the N×N aggregation loop).
# --------------------------------------------------------------------------
def _project_kernel(x_ref, w_ref, out_ref):
    out_ref[...] = jnp.dot(
        x_ref[...].astype(jnp.bfloat16),
        w_ref[...].astype(jnp.bfloat16),
        preferred_element_type=jnp.float32,
    ).astype(out_ref.dtype)


def _project(x, w, tm):
    n, f = x.shape
    h = w.shape[1]
    return pl.pallas_call(
        _project_kernel,
        out_shape=jax.ShapeDtypeStruct((n, h), jnp.bfloat16),
        grid_spec=pltpu.PrefetchScalarGridSpec(
            num_scalar_prefetch=0,
            grid=(n // tm,),
            in_specs=[
                pl.BlockSpec((tm, f), lambda i: (i, 0)),
                pl.BlockSpec((f, h), lambda i: (0, 0)),
            ],
            out_specs=pl.BlockSpec((tm, h), lambda i: (i, 0)),
        ),
        compiler_params=pltpu.CompilerParams(
            dimension_semantics=("parallel",),
            vmem_limit_bytes=32 * 1024 * 1024,
        ),
    )(x, w)


# --------------------------------------------------------------------------
# Tiled aggregation  Â @ Y + b  with fused epilogue (ReLU or log_softmax).
# --------------------------------------------------------------------------
def _aggregate_kernel(adj_ref, y_ref, b_ref, out_ref, acc_ref, *,
                      activation, valid_cols):
    k = pl.program_id(1)

    @pl.when(k == 0)
    def _():
        acc_ref[...] = jnp.zeros_like(acc_ref)

    # bf16 Â tile @ bf16 Y tile on the MXU, f32 accumulation.
    acc_ref[...] += jnp.dot(adj_ref[...], y_ref[...],
                            preferred_element_type=jnp.float32)

    @pl.when(k == pl.num_programs(1) - 1)
    def _():
        z = acc_ref[...] + b_ref[...]
        if activation == "relu":
            out_ref[...] = jnp.maximum(z, 0.0).astype(out_ref.dtype)
        else:  # log_softmax over the first `valid_cols` lanes (rest is padding)
            lane = jax.lax.broadcasted_iota(jnp.int32, z.shape, 1)
            z = jnp.where(lane < valid_cols, z, -jnp.inf)
            m = jnp.max(z, axis=1, keepdims=True)
            s = z - m
            lse = jnp.log(jnp.sum(jnp.exp(s), axis=1, keepdims=True))
            out_ref[...] = (s - lse).astype(out_ref.dtype)


def _aggregate(adj, y, b, *, activation, valid_cols, out_dtype, tm, tk):
    # TODO(synk): for realistic sparse graphs, add a scalar-prefetched per-tile
    # block mask (PrefetchScalarGridSpec) to skip all-zero Â tiles.
    n = adj.shape[0]
    h = y.shape[1]
    kernel = functools.partial(_aggregate_kernel, activation=activation,
                               valid_cols=valid_cols)
    return pl.pallas_call(
        kernel,
        out_shape=jax.ShapeDtypeStruct((n, h), out_dtype),
        grid_spec=pltpu.PrefetchScalarGridSpec(
            num_scalar_prefetch=0,
            grid=(n // tm, n // tk),                 # reduction axis last
            in_specs=[
                pl.BlockSpec((tm, tk), lambda i, k: (i, k)),   # Â tile
                pl.BlockSpec((tk, h), lambda i, k: (k, 0)),    # projected RHS
                pl.BlockSpec((1, h), lambda i, k: (0, 0)),     # bias
            ],
            out_specs=pl.BlockSpec((tm, h), lambda i, k: (i, 0)),
            scratch_shapes=[pltpu.VMEM((tm, h), jnp.float32)],
        ),
        compiler_params=pltpu.CompilerParams(
            dimension_semantics=("parallel", "arbitrary"),
            vmem_limit_bytes=32 * 1024 * 1024,
        ),
    )(adj, y, b)


# --------------------------------------------------------------------------
# Full forward pass.
# --------------------------------------------------------------------------
def gnn_forward(adj, x, w1, b1, w2, b2):
    n, f = x.shape
    hid = w1.shape[1]
    c = w2.shape[1]

    # Pad nodes to a multiple of 256 so the Â contraction tile is full MXU
    # width; pad classes to 128 so layer-2 output is lane-dense.
    n_pad = _round_up(max(n, 256), 256)
    c_pad = _round_up(max(c, 128), 128)
    tm = 256
    tk = 256

    adj_p = jnp.zeros((n_pad, n_pad), jnp.bfloat16).at[:n, :n].set(
        adj.astype(jnp.bfloat16))
    x_p = jnp.zeros((n_pad, f), jnp.float32).at[:n, :].set(x)
    w2_p = jnp.zeros((hid, c_pad), jnp.float32).at[:, :c].set(w2)
    b1_p = b1.reshape(1, hid).astype(jnp.float32)
    b2_p = jnp.zeros((1, c_pad), jnp.float32).at[:, :c].set(b2.reshape(1, c))

    # ---- layer 1: Â @ (X W1) + b1, ReLU ----
    xw1 = _project(x_p, w1, tm)                                  # [n_pad, hid] bf16
    h = _aggregate(adj_p, xw1, b1_p, activation="relu",
                   valid_cols=hid, out_dtype=jnp.bfloat16, tm=tm, tk=tk)

    # TODO(synk): F.dropout(x, training=self.training) — identity (eval mode);
    # training-mode RNG masking not applied.

    # ---- layer 2: Â @ (H W2) + b2, log_softmax over classes ----
    hw2 = _project(h, w2_p, tm)                                  # [n_pad, c_pad] bf16
    out = _aggregate(adj_p, hw2, b2_p, activation="log_softmax",
                     valid_cols=c, out_dtype=jnp.float32, tm=tm, tk=tk)

    return out[:n, :c]


def normalized_adjacency(edge_index, num_nodes):
    """Dense Â = D^-1/2 (A + I) D^-1/2, matching PyG GCNConv with self-loops."""
    row, col = edge_index[0], edge_index[1]          # row = src, col = dst
    loop = jnp.arange(num_nodes, dtype=edge_index.dtype)
    row = jnp.concatenate([row, loop])
    col = jnp.concatenate([col, loop])
    deg = jnp.zeros((num_nodes,), jnp.float32).at[col].add(1.0)
    dis = jnp.where(deg > 0, 1.0 / jnp.sqrt(deg), 0.0)
    norm = dis[row] * dis[col]
    # out[i] = sum over edges (j -> i) of norm * x[j]  =>  Â[col, row] += norm
    adj = jnp.zeros((num_nodes, num_nodes), jnp.float32).at[col, row].add(norm)
    return adj


if __name__ == "__main__":
    key = jax.random.PRNGKey(0)
    num_nodes, num_features, hidden, num_classes = 64, 16, 64, 10
    num_edges = 128

    k_x, k_e1, k_e2, k_w1, k_w2 = jax.random.split(key, 5)

    # node features and a deterministic random graph
    x = jax.random.normal(k_x, (num_nodes, num_features), jnp.float32)
    src = jax.random.randint(k_e1, (num_edges,), 0, num_nodes, jnp.int32)
    dst = jax.random.randint(k_e2, (num_edges,), 0, num_nodes, jnp.int32)
    edge_index = jnp.stack([src, dst], axis=0)       # [2, E]

    # deterministic Glorot-uniform weights, zero biases (GCNConv shapes)
    s1 = (6.0 / (num_features + hidden)) ** 0.5
    s2 = (6.0 / (hidden + num_classes)) ** 0.5
    w1 = jax.random.uniform(k_w1, (num_features, hidden), jnp.float32, -s1, s1)
    b1 = jnp.zeros((1, hidden), jnp.float32)
    w2 = jax.random.uniform(k_w2, (hidden, num_classes), jnp.float32, -s2, s2)
    b2 = jnp.zeros((1, num_classes), jnp.float32)

    adj = normalized_adjacency(edge_index, num_nodes)

    out = gnn_forward(adj, x, w1, b1, w2, b2)
    jax.block_until_ready(out)

    # sanity: each row of the log_softmax output exponentiates & sums to 1
    assert out.shape == (num_nodes, num_classes)
    assert jnp.allclose(jnp.sum(jnp.exp(out), axis=1), 1.0, atol=1e-4)
    print("KERNEL_OK")
</pallas_src>

<mosaic_0001>
module attributes {stable_mosaic.version = 11 : i64} {
  func.func @_project_kernel(%arg0: i32, %arg1: memref<256x16xf32, #tpu.memory_space<vmem>>, %arg2: memref<16x64xf32, #tpu.memory_space<vmem>>, %arg3: memref<256x64xbf16, #tpu.memory_space<vmem>>) attributes {dimension_semantics = [#tpu.dimension_semantics<parallel>], iteration_bounds = array<i64: 1>, scalar_prefetch = 0 : i64, scratch_operands = 0 : i64, tpu.core_type = #tpu.core_type<tc>, window_params = [{transform_indices = @transform_0, window_bounds = array<i64: 256, 16>}, {pipeline_mode = #tpu.pipeline_mode<synchronous>, transform_indices = @transform_1, window_bounds = array<i64: 16, 64>}, {transform_indices = @transform_2, window_bounds = array<i64: 256, 64>}]} {
    %c0 = arith.constant 0 : index
    %c0_0 = arith.constant 0 : index
    %0 = vector.load %arg1[%c0, %c0_0] : memref<256x16xf32, #tpu.memory_space<vmem>>, vector<256x16xf32>
    %1 = arith.truncf %0 : vector<256x16xf32> to vector<256x16xbf16>
    %c0_1 = arith.constant 0 : index
    %c0_2 = arith.constant 0 : index
    %2 = vector.load %arg2[%c0_1, %c0_2] : memref<16x64xf32, #tpu.memory_space<vmem>>, vector<16x64xf32>
    %3 = arith.truncf %2 : vector<16x64xf32> to vector<16x64xbf16>
    %cst = arith.constant dense<0.000000e+00> : vector<256x64xf32>
    %4 = tpu.matmul %1, %3, %cst {dimension_numbers = #tpu.dot_dimension_numbers<[1], [0], [0], [1], [0, 0, 1, 1], [], []>} : vector<256x16xbf16>, vector<16x64xbf16>, vector<256x64xf32> -> vector<256x64xf32>
    %5 = arith.truncf %4 : vector<256x64xf32> to vector<256x64xbf16>
    %c0_3 = arith.constant 0 : index
    %c0_4 = arith.constant 0 : index
    %6 = vector.load %arg3[%c0_3, %c0_4] : memref<256x64xbf16, #tpu.memory_space<vmem>>, vector<256x64xbf16>
    tpu.vector_store %arg3[%c0_3, %c0_4], %5 {strides = array<i32>} : memref<256x64xbf16, #tpu.memory_space<vmem>>, vector<256x64xbf16>,
    return
  }
  func.func @transform_0(%arg0: i32) -> (i32, i32) {
    %c0_i32 = arith.constant 0 : i32
    %c0_i32_0 = arith.constant 0 : i32
    return %arg0, %c0_i32 : i32, i32
  }
  func.func @transform_1(%arg0: i32) -> (i32, i32) {
    %c0_i32 = arith.constant 0 : i32
    %c0_i32_0 = arith.constant 0 : i32
    %c0_i32_1 = arith.constant 0 : i32
    return %c0_i32, %c0_i32_0 : i32, i32
  }
  func.func @transform_2(%arg0: i32) -> (i32, i32) {
    %c0_i32 = arith.constant 0 : i32
    %c0_i32_0 = arith.constant 0 : i32
    return %arg0, %c0_i32 : i32, i32
  }
}

</mosaic_0001>

<bundles_post_ra>
// kernel: tpu_custom_call.1
= control target key start
LH: loop header
LB: loop body
LE: loop exit
PB: predicated region body
PF: predicated region fallthrough
CT: control target
= control target key end

     0   :  { %vm63_vm0 = vcmask 130048   ;;  %vm401_vm1 = vcmask 519168   ;;  %s832_s1 = inlined_call_operand.vmem [shape: f32[16,64], index: 1, kind: input, shape index: {}]   ;;  %s833_s0 = inlined_call_operand.vmem [shape: f32[256,16], index: 0, kind: input, shape index: {}]   ;;  %s834_s2 = inlined_call_operand.vmem [shape: bf16[256,64], index: 2, kind: output, shape index: {}]  }
   0x1   :  { %v60_v0 = vld [vmem:[%s832_s1] sm:$0xff]  ;;  %v61_v1 = vld [vmem:[%s832_s1 + $0x8] sm:$0xff]  ;;  %v14_v9 = vld [vmem:[%s833_s0 + $0x10] sm:$0xff] }
   0x2   :  { %v12_v2 = vld [vmem:[%s833_s0] sm:$0xff]  ;;  %v62_v3 = vpack.c.bf16 %v61_v1, %v60_v0  ;;  %v13_v4 = vld [vmem:[%s833_s0 + $0x8] sm:$0xff]  ;;  %v15_v10 = vld [vmem:[%s833_s0 + $0x18] sm:$0xff] }
   0x3   :  { %v28_v5 = vld [vmem:[%s833_s0 + $0x80] sm:$0xff]  ;;  %v29_v6 = vld [vmem:[%s833_s0 + $0x88] sm:$0xff]  ;;  %v44_v7 = vpack.c.bf16 %v13_v4, %v12_v2  ;;  %v30_v11 = vld [vmem:[%s833_s0 + $0x90] sm:$0xff]  ;;  %v45_v12 = vpack.c.bf16 %v15_v10, %v14_v9 }
   0x4   :  { %v52_v8 = vpack.c.bf16 %v29_v6, %v28_v5  ;;  %535 = vmatprep.subr.bf16.mxu0 %v62_v3  ;;  %569 = vmatprep.subr.bf16.mxu1 %v62_v3  ;;  %v31_v13 = vld [vmem:[%s833_s0 + $0x98] sm:$0xff]  ;;  %v16_v14 = vld [vmem:[%s833_s0 + $0x20] sm:$0xff]  ;;  %v17_v15 = vld [vmem:[%s833_s0 + $0x28] sm:$0xff] }
   0x5   :  { %536 = vmatpush3.bf16.msra.mxu0 %v62_v3  ;;  %570 = vmatpush3.bf16.msra.mxu1 %v62_v3  ;;  %v53_v16 = vpack.c.bf16 %v31_v13, %v30_v11  ;;  %v46_v17 = vpack.c.bf16 %v17_v15, %v16_v14  ;;  %v32_v18 = vld [vmem:[%s833_s0 + $0xa0] sm:$0xff]  ;;  %v33_v19 = vld [vmem:[%s833_s0 + $0xa8] sm:$0xff]  ;;  %v18_v21 = vld [vmem:[%s833_s0 + $0x30] sm:$0xff] }
   0x6   :  { %537 = vmatprep.mubr.msk.bf16.mxu0 %vm63_vm0, %v44_v7  ;;  %553 = vmatprep.mubr.msk.bf16.mxu1 %vm63_vm0, %v52_v8  ;;  %v54_v20 = vpack.c.bf16 %v33_v19, %v32_v18  ;;  %v19_v22 = vld [vmem:[%s833_s0 + $0x38] sm:$0xff]  ;;  %v34_v23 = vld [vmem:[%s833_s0 + $0xb0] sm:$0xff]  ;;  %v20_v25 = vld [vmem:[%s833_s0 + $0x40] sm:$0xff] }
   0x7   :  { %v35_v24 = vld [vmem:[%s833_s0 + $0xb8] sm:$0xff]  ;;  %v21_v26 = vld [vmem:[%s833_s0 + $0x48] sm:$0xff]  ;;  %v36_v27 = vld [vmem:[%s833_s0 + $0xc0] sm:$0xff]  ;;  %v47_v29 = vpack.c.bf16 %v19_v22, %v18_v21 }
   0x8   :  { %538 = vmatmul.mubr.msk.bf16.vlgmr.msra.gmra.mxu0 %vm63_vm0, %v45_v12  ;;  %554 = vmatmul.mubr.msk.bf16.vlgmr.msra.gmra.mxu1 %vm63_vm0, %v53_v16  ;;  %v37_v28 = vld [vmem:[%s833_s0 + $0xc8] sm:$0xff]  ;;  %v55_v30 = vpack.c.bf16 %v35_v24, %v34_v23  ;;  %v48_v31 = vpack.c.bf16 %v21_v26, %v20_v25  ;;  %v22_v33 = vld [vmem:[%s833_s0 + $0x50] sm:$0xff]  ;;  %v23_v34 = vld [vmem:[%s833_s0 + $0x58] sm:$0xff] }
   0x9   :  { %541 = vmatprep.mubr.msk.bf16.mxu0 %vm63_vm0, %v46_v17  ;;  %557 = vmatprep.mubr.msk.bf16.mxu1 %vm63_vm0, %v54_v20  ;;  %v56_v32 = vpack.c.bf16 %v37_v28, %v36_v27  ;;  %v38_v35 = vld [vmem:[%s833_s0 + $0xd0] sm:$0xff]  ;;  %v39_v36 = vld [vmem:[%s833_s0 + $0xd8] sm:$0xff]  ;;  %v24_v37 = vld [vmem:[%s833_s0 + $0x60] sm:$0xff]  ;;  %v49_v41 = vpack.c.bf16 %v23_v34, %v22_v33 }
   0xa   :  { %v25_v38 = vld [vmem:[%s833_s0 + $0x68] sm:$0xff]  ;;  %v40_v39 = vld [vmem:[%s833_s0 + $0xe0] sm:$0xff]  ;;  %v57_v42 = vpack.c.bf16 %v39_v36, %v38_v35  ;;  %v26_v45 = vld [vmem:[%s833_s0 + $0x70] sm:$0xff] }
   0xb   :  { %v41_v40 = vld [vmem:[%s833_s0 + $0xe8] sm:$0xff]  ;;  %v50_v43 = vpack.c.bf16 %v25_v38, %v24_v37  ;;  %v27_v46 = vld [vmem:[%s833_s0 + $0x78] sm:$0xff]  ;;  %v42_v47 = vld [vmem:[%s833_s0 + $0xf0] sm:$0xff] }
   0xc   :  { %v58_v44 = vpack.c.bf16 %v41_v40, %v40_v39  ;;  %v43_v48 = vld [vmem:[%s833_s0 + $0xf8] sm:$0xff]  ;;  %v51_v49 = vpack.c.bf16 %v27_v46, %v26_v45 }
   0xd   :  { %v59_v50 = vpack.c.bf16 %v43_v48, %v42_v47 }
  0x10   :  { %542 = vmatmul.mubr.msk.bf16.gmra.mxu0 %vm63_vm0, %v47_v29  ;;  %558 = vmatmul.mubr.msk.bf16.gmra.mxu1 %vm63_vm0, %v55_v30 }
  0x11   :  { %545 = vmatprep.mubr.msk.bf16.mxu0 %vm63_vm0, %v48_v31  ;;  %561 = vmatprep.mubr.msk.bf16.mxu1 %vm63_vm0, %v56_v32 }
  0x18   :  { %546 = vmatmul.mubr.msk.bf16.gmra.mxu0 %vm63_vm0, %v49_v41  ;;  %562 = vmatmul.mubr.msk.bf16.gmra.mxu1 %vm63_vm0, %v57_v42 }
  0x19   :  { %549 = vmatprep.mubr.msk.bf16.mxu0 %vm63_vm0, %v50_v43  ;;  %565 = vmatprep.mubr.msk.bf16.mxu1 %vm63_vm0, %v58_v44 }
  0x20   :  { %550 = vmatmul.mubr.msk.bf16.gmra.mxu0 %vm63_vm0, %v51_v49  ;;  %566 = vmatmul.mubr.msk.bf16.gmra.mxu1 %vm63_vm0, %v59_v50 }
  0xc8   :  { %v539_v51 = vpop.f32.mrf.mxu0  ;;  %v555_v52 = vpop.f32.mrf.mxu1 }
  0xc9   :  { %v488_v53 = vpack.c.bf16 %v539_v51, %v539_v51  ;;  %v504_v54 = vpack.c.bf16 %v555_v52, %v555_v52 }
  0xca   :  { %v146_v55 = vpop.f32.mrf.mxu0  ;;  %v210_v56 = vpop.f32.mrf.mxu1 }
  0xcb   :  { %404 = vst.msk [vmem:[%s834_s2 + $0x8] sm:$0xf] %vm401_vm1, %v488_v53  ;;  %420 = vst.msk [vmem:[%s834_s2 + $0x48] sm:$0xf] %vm401_vm1, %v504_v54  ;;  %v486_v57 = vpack.c.bf16 %v146_v55, %v146_v55  ;;  %v502_v58 = vpack.c.bf16 %v210_v56, %v210_v56 }
  0xcc   :  { %v540_v59 = vpop.f32.mrf.mxu0  ;;  %v556_v60 = vpop.f32.mrf.mxu1 }
  0xcd   :  { %402 = vst.msk [vmem:[%s834_s2] sm:$0xf] %vm401_vm1, %v486_v57  ;;  %418 = vst.msk [vmem:[%s834_s2 + $0x40] sm:$0xf] %vm401_vm1, %v502_v58  ;;  %v489_v61 = vpack.c.bf16 %v540_v59, %v540_v59  ;;  %v505_v62 = vpack.c.bf16 %v556_v60, %v556_v60 }
  0xce   :  { %v149_v63 = vpop.f32.mrf.mxu0  ;;  %v213_v0 = vpop.f32.mrf.mxu1 }
  0xcf   :  { %405 = vst.msk [vmem:[%s834_s2 + $0xc] sm:$0xf] %vm401_vm1, %v489_v61  ;;  %421 = vst.msk [vmem:[%s834_s2 + $0x4c] sm:$0xf] %vm401_vm1, %v505_v62  ;;  %v487_v1 = vpack.c.bf16 %v149_v63, %v149_v63  ;;  %v503_v2 = vpack.c.bf16 %v213_v0, %v213_v0 }
  0xd0   :  { %v543_v3 = vpop.f32.mrf.mxu0  ;;  %v559_v4 = vpop.f32.mrf.mxu1 }
  0xd1   :  { %403 = vst.msk [vmem:[%s834_s2 + $0x4] sm:$0xf] %vm401_vm1, %v487_v1  ;;  %419 = vst.msk [vmem:[%s834_s2 + $0x44] sm:$0xf] %vm401_vm1, %v503_v2  ;;  %v492_v5 = vpack.c.bf16 %v543_v3, %v543_v3  ;;  %v508_v6 = vpack.c.bf16 %v559_v4, %v559_v4 }
  0xd2   :  { %v162_v7 = vpop.f32.mrf.mxu0  ;;  %v226_v8 = vpop.f32.mrf.mxu1 }
  0xd3   :  { %408 = vst.msk [vmem:[%s834_s2 + $0x18] sm:$0xf] %vm401_vm1, %v492_v5  ;;  %424 = vst.msk [vmem:[%s834_s2 + $0x58] sm:$0xf] %vm401_vm1, %v508_v6  ;;  %v490_v9 = vpack.c.bf16 %v162_v7, %v162_v7  ;;  %v506_v10 = vpack.c.bf16 %v226_v8, %v226_v8 }
  0xd4   :  { %v544_v11 = vpop.f32.mrf.mxu0  ;;  %v560_v12 = vpop.f32.mrf.mxu1 }
  0xd5   :  { %406 = vst.msk [vmem:[%s834_s2 + $0x10] sm:$0xf] %vm401_vm1, %v490_v9  ;;  %422 = vst.msk [vmem:[%s834_s2 + $0x50] sm:$0xf] %vm401_vm1, %v506_v10  ;;  %v493_v13 = vpack.c.bf16 %v544_v11, %v544_v11  ;;  %v509_v14 = vpack.c.bf16 %v560_v12, %v560_v12 }
  0xd6   :  { %v165_v15 = vpop.f32.mrf.mxu0  ;;  %v229_v16 = vpop.f32.mrf.mxu1 }
  0xd7   :  { %409 = vst.msk [vmem:[%s834_s2 + $0x1c] sm:$0xf] %vm401_vm1, %v493_v13  ;;  %425 = vst.msk [vmem:[%s834_s2 + $0x5c] sm:$0xf] %vm401_vm1, %v509_v14  ;;  %v491_v17 = vpack.c.bf16 %v165_v15, %v165_v15  ;;  %v507_v18 = vpack.c.bf16 %v229_v16, %v229_v16 }
  0xd8   :  { %v547_v19 = vpop.f32.mrf.mxu0  ;;  %v563_v20 = vpop.f32.mrf.mxu1 }
  0xd9   :  { %407 = vst.msk [vmem:[%s834_s2 + $0x14] sm:$0xf] %vm401_vm1, %v491_v17  ;;  %423 = vst.msk [vmem:[%s834_s2 + $0x54] sm:$0xf] %vm401_vm1, %v507_v18  ;;  %v496_v21 = vpack.c.bf16 %v547_v19, %v547_v19  ;;  %v512_v22 = vpack.c.bf16 %v563_v20, %v563_v20 }
  0xda   :  { %v178_v23 = vpop.f32.mrf.mxu0  ;;  %v242_v24 = vpop.f32.mrf.mxu1 }
  0xdb   :  { %412 = vst.msk [vmem:[%s834_s2 + $0x28] sm:$0xf] %vm401_vm1, %v496_v21  ;;  %428 = vst.msk [vmem:[%s834_s2 + $0x68] sm:$0xf] %vm401_vm1, %v512_v22  ;;  %v494_v25 = vpack.c.bf16 %v178_v23, %v178_v23  ;;  %v510_v26 = vpack.c.bf16 %v242_v24, %v242_v24 }
  0xdc   :  { %v548_v27 = vpop.f32.mrf.mxu0  ;;  %v564_v28 = vpop.f32.mrf.mxu1 }
  0xdd   :  { %410 = vst.msk [vmem:[%s834_s2 + $0x20] sm:$0xf] %vm401_vm1, %v494_v25  ;;  %426 = vst.msk [vmem:[%s834_s2 + $0x60] sm:$0xf] %vm401_vm1, %v510_v26  ;;  %v497_v29 = vpack.c.bf16 %v548_v27, %v548_v27  ;;  %v513_v30 = vpack.c.bf16 %v564_v28, %v564_v28 }
  0xde   :  { %v181_v31 = vpop.f32.mrf.mxu0  ;;  %v245_v32 = vpop.f32.mrf.mxu1 }
  0xdf   :  { %413 = vst.msk [vmem:[%s834_s2 + $0x2c] sm:$0xf] %vm401_vm1, %v497_v29  ;;  %429 = vst.msk [vmem:[%s834_s2 + $0x6c] sm:$0xf] %vm401_vm1, %v513_v30  ;;  %v495_v33 = vpack.c.bf16 %v181_v31, %v181_v31  ;;  %v511_v34 = vpack.c.bf16 %v245_v32, %v245_v32 }
  0xe0   :  { %v551_v35 = vpop.f32.mrf.mxu0  ;;  %v567_v36 = vpop.f32.mrf.mxu1 }
  0xe1   :  { %411 = vst.msk [vmem:[%s834_s2 + $0x24] sm:$0xf] %vm401_vm1, %v495_v33  ;;  %427 = vst.msk [vmem:[%s834_s2 + $0x64] sm:$0xf] %vm401_vm1, %v511_v34  ;;  %v500_v37 = vpack.c.bf16 %v551_v35, %v551_v35  ;;  %v516_v38 = vpack.c.bf16 %v567_v36, %v567_v36 }
  0xe2   :  { %v194_v39 = vpop.f32.mrf.mxu0  ;;  %v258_v40 = vpop.f32.mrf.mxu1 }
  0xe3   :  { %416 = vst.msk [vmem:[%s834_s2 + $0x38] sm:$0xf] %vm401_vm1, %v500_v37  ;;  %432 = vst.msk [vmem:[%s834_s2 + $0x78] sm:$0xf] %vm401_vm1, %v516_v38  ;;  %v498_v41 = vpack.c.bf16 %v194_v39, %v194_v39  ;;  %v514_v42 = vpack.c.bf16 %v258_v40, %v258_v40 }
  0xe4   :  { %v552_v43 = vpop.f32.mrf.mxu0  ;;  %v568_v44 = vpop.f32.mrf.mxu1 }
  0xe5   :  { %414 = vst.msk [vmem:[%s834_s2 + $0x30] sm:$0xf] %vm401_vm1, %v498_v41  ;;  %430 = vst.msk [vmem:[%s834_s2 + $0x70] sm:$0xf] %vm401_vm1, %v514_v42  ;;  %v501_v45 = vpack.c.bf16 %v552_v43, %v552_v43  ;;  %v517_v46 = vpack.c.bf16 %v568_v44, %v568_v44 }
  0xe6   :  { %v197_v47 = vpop.f32.mrf.mxu0  ;;  %v261_v48 = vpop.f32.mrf.mxu1 }
  0xe7   :  { %417 = vst.msk [vmem:[%s834_s2 + $0x3c] sm:$0xf] %vm401_vm1, %v501_v45  ;;  %433 = vst.msk [vmem:[%s834_s2 + $0x7c] sm:$0xf] %vm401_vm1, %v517_v46  ;;  %v499_v49 = vpack.c.bf16 %v197_v47, %v197_v47  ;;  %v515_v50 = vpack.c.bf16 %v261_v48, %v261_v48 }
  0xe9   :  { %415 = vst.msk [vmem:[%s834_s2 + $0x34] sm:$0xf] %vm401_vm1, %v499_v49  ;;  %431 = vst.msk [vmem:[%s834_s2 + $0x74] sm:$0xf] %vm401_vm1, %v515_v50 }

</bundles_post_ra>
